<compile_context>
chip_gen: v7x
topology: tpu7x:2x2x1
jax: 0.10.0
libtpu: 0.0.40
codegen_flags: <defaults>
</compile_context>

<pallas_src>
import functools

import jax
import jax.numpy as jnp
from jax import lax
from jax.experimental import pallas as pl
from jax.experimental.pallas import tpu as pltpu


def _rup(a, m):
    return -(-a // m) * m


def _sepconv_kernel(xm_ref, xh_ref, wc_ref, o_ref, *,
                    K, dilation, Wp, Wo, TH, Cin, G):
    """One (batch-fold, row-tile) grid step of the fused separable conv.

    xm_ref : (1, 1, G*Cin, TH*Wp)  main flattened window; G images' channels
                                   interleaved on sublanes (image-major).
    xh_ref : (1, 1, G*Cin, HLEN)   bottom halo rows (flattened) for this tile.
    wc_ref : (Cout, K*K*Cin)       fused depthwise*pointwise weight (resident).
    o_ref  : (G, Cout, TH*Wo)      lane-dense output tiles, NC(HW) order.
    """
    seg_w = TH * Wp
    # Stitch main + halo into one contiguous flattened window: (G*Cin, SEG).
    win = jnp.concatenate([xm_ref[0, 0], xh_ref[0, 0]], axis=1)

    # im2col on the fly: K*K shifted lane-slices per image become extra MXU
    # contraction depth; the G images are concatenated along the lane (RHS)
    # axis so ONE matmul covers the whole step.
    per_img = []
    for g in range(G):
        xg = win[g * Cin:(g + 1) * Cin]                       # (Cin, SEG)
        taps = []
        for kh in range(K):
            for kw in range(K):
                off = (kh * Wp + kw) * dilation               # static offset
                taps.append(xg[:, off:off + seg_w])           # (Cin, seg_w)
        per_img.append(jnp.concatenate(taps, axis=0))         # (K*K*Cin, seg_w)
    patches = jnp.concatenate(per_img, axis=1)                # (KKCin, G*seg_w)

    # Fused depthwise + pointwise conv on the MXU, f32 accumulation.
    res = jnp.dot(wc_ref[...], patches,
                  preferred_element_type=jnp.float32)         # (Cout, G*seg_w)

    # Per image: drop the (Wp - Wo) wrap-around columns of each output row and
    # emit one dense (Cout, TH*Wo) store.
    for g in range(G):
        rg = res[:, g * seg_w:(g + 1) * seg_w]
        rows = [rg[:, r * Wp:r * Wp + Wo] for r in range(TH)]
        o_ref[g] = jnp.concatenate(rows, axis=1).astype(o_ref.dtype)


def _pick_row_tile(Ho, Wo, lane_budget=4096):
    """Output rows per grid step.  Prefer (in order): lane-dense stores
    (TH*Wo % 128 == 0, or full extent), >=2 row tiles (keeps both v7x
    TensorCores busy even at N=1), fits under the lane budget, then the
    largest tile."""
    divs = [th for th in range(1, Ho + 1) if Ho % th == 0]

    def score(th):
        lanes = th * Wo
        dense = (lanes % 128 == 0) or th == Ho
        multi = (Ho // th) >= 2
        fits = lanes <= lane_budget
        return (dense, multi, fits, lanes if fits else -lanes)

    return max(divs, key=score)


def _pick_batch_fold(N, Cin, itemsize):
    """Fold G images per grid step so G*Cin approaches the sublane pack
    (8 rows for 4-byte, 16 for 2-byte dtypes)."""
    sub = 8 if itemsize >= 4 else (16 if itemsize == 2 else 32)
    target = max(1, sub // max(Cin, 1))
    g = 1
    for cand in range(1, min(N, target) + 1):
        if N % cand == 0:
            g = cand
    return g


def separable_conv2d(x_nchw, w_dw, w_pw, *, stride=1, padding=0, dilation=1,
                     compute_dtype=None):
    """SeparableConv2d forward (bias=False).

    x_nchw : (N, Cin, H, W)
    w_dw   : (Cin, 1, K, K)      depthwise (groups=Cin) conv weight
    w_pw   : (Cout, Cin, 1, 1)   pointwise 1x1 conv weight
    compute_dtype : optional (e.g. jnp.bfloat16) MXU operand dtype; f32 accum.
    returns: (N, Cout, Ho, Wo)
    """
    N, Cin, H, W = x_nchw.shape
    K = w_dw.shape[-1]
    Cout = w_pw.shape[0]
    out_dt = x_nchw.dtype
    cdt = jnp.dtype(compute_dtype) if compute_dtype is not None else jnp.dtype(out_dt)

    Hp, Wp = H + 2 * padding, W + 2 * padding
    Ho = Hp - dilation * (K - 1)            # stride-1 ("dense") output extents
    Wo = Wp - dilation * (K - 1)
    assert Ho >= 1 and Wo >= 1, "kernel window larger than padded input"

    G = _pick_batch_fold(N, Cin, cdt.itemsize)   # images folded per step
    NB = N // G
    TH = _pick_row_tile(Ho, Wo)                  # output rows per step
    T = Ho // TH                                 # row tiles per image
    HB = dilation * (K - 1)                      # halo rows below each tile
    L = TH * Wp                                  # flattened main-window length
    HLEN = HB * Wp + dilation * (K - 1)          # flattened halo length

    # ---- glue (plain JAX, fuses into one relayout pass): pad once, cut
    # NON-overlapping main row-tile blocks, plus a tiny separate halo array.
    x = x_nchw.astype(cdt)
    x_pad = jnp.pad(x, ((0, 0), (0, 0),
                        (padding, padding), (padding, padding)))

    # Main body: (NB, T, G*Cin, L); channels of the G folded images interleaved
    # on the sublane axis (image-major), no halo duplication.
    xm = x_pad[:, :, :Ho, :].reshape(N, Cin, T, L)
    xm = (xm.reshape(NB, G, Cin, T, L)
            .transpose(0, 3, 1, 2, 4)
            .reshape(NB, T, G * Cin, L))

    # Halo: only the HB rows below each tile (plus d*(K-1) wrap elements) —
    # a small gather, not a duplicated copy of the whole input.
    if HLEN > 0:
        x_flat = x_pad.reshape(N, Cin, Hp * Wp)
        tail = dilation * (K - 1)                # keep last tile's halo in-bounds
        if tail:
            x_flat = jnp.pad(x_flat, ((0, 0), (0, 0), (0, tail)))
        xh = jnp.stack(
            [x_flat[:, :, (t + 1) * L:(t + 1) * L + HLEN] for t in range(T)],
            axis=1)                              # (N, T, Cin, HLEN)
        xh = (xh.reshape(NB, G, T, Cin, HLEN)
                .transpose(0, 2, 1, 3, 4)
                .reshape(NB, T, G * Cin, HLEN))
    else:                                        # K == 1: no halo needed
        HLEN = 1
        xh = jnp.zeros((NB, T, G * Cin, HLEN), cdt)

    # Fused depthwise*pointwise weight: Wc[cout, (kh*K+kw)*Cin + cin].
    wdw = jnp.transpose(w_dw[:, 0], (1, 2, 0)).reshape(K * K, Cin)   # (K*K, Cin)
    wpw = w_pw[:, :, 0, 0]                                           # (Cout, Cin)
    wc = (wpw[:, None, :] * wdw[None, :, :]).reshape(Cout, K * K * Cin)
    wc = wc.astype(cdt)

    kernel = functools.partial(_sepconv_kernel, K=K, dilation=dilation,
                               Wp=Wp, Wo=Wo, TH=TH, Cin=Cin, G=G)

    # ---- honest VMEM budget: I/O blocks (double buffered) + in-kernel temps
    # (stitched window, im2col patches, f32 accumulator/epilogue), capped well
    # below v7x's 64 MiB per-core VMEM.
    isz = cdt.itemsize
    oisz = jnp.dtype(out_dt).itemsize
    lane_out = TH * Wo
    blk_in = _rup(G * Cin, 8) * (_rup(L, 128) + _rup(HLEN, 128)) * isz
    blk_w = _rup(Cout, 8) * _rup(K * K * Cin, 128) * isz
    blk_out = G * _rup(Cout, 8) * _rup(lane_out, 128) * oisz
    seg = L + HLEN
    tmps = (_rup(G * Cin, 8) * _rup(seg, 128) * isz                 # stitched window
            + _rup(K * K * Cin, 8) * _rup(G * L, 128) * isz         # im2col patches
            + 2 * _rup(Cout, 8) * _rup(G * L, 128) * 4)             # f32 result + epilogue
    vmem_need = 2 * (blk_in + blk_out + blk_w) + tmps
    vmem_limit = int(min(48 * 2**20, max(4 * 2**20, 2 * vmem_need)))

    flops = int(2 * N * Ho * Wo * Cout * K * K * Cin)
    bytes_accessed = int(xm.size * isz + xh.size * isz
                         + Cout * K * K * Cin * isz
                         + N * Cout * Ho * Wo * oisz)

    out_flat = pl.pallas_call(
        kernel,
        out_shape=jax.ShapeDtypeStruct((N, Cout, Ho * Wo), out_dt),
        grid_spec=pltpu.PrefetchScalarGridSpec(
            num_scalar_prefetch=0,
            grid=(NB, T),
            in_specs=[
                pl.BlockSpec((1, 1, G * Cin, L), lambda nb, t: (nb, t, 0, 0)),
                pl.BlockSpec((1, 1, G * Cin, HLEN), lambda nb, t: (nb, t, 0, 0)),
                pl.BlockSpec((Cout, K * K * Cin), lambda nb, t: (0, 0)),
            ],
            out_specs=pl.BlockSpec((G, Cout, lane_out), lambda nb, t: (nb, 0, t)),
        ),
        compiler_params=pltpu.CompilerParams(
            dimension_semantics=("parallel", "parallel"),
            vmem_limit_bytes=vmem_limit),
        cost_estimate=pl.CostEstimate(flops=flops, transcendentals=0,
                                      bytes_accessed=bytes_accessed),
    )(xm, xh, wc)

    out = out_flat.reshape(N, Cout, Ho, Wo)      # free reshape (already NCHW)
    if stride > 1:
        # TODO(synk): subsample inside the kernel epilogue instead of computing
        # the dense output (current path wastes ~stride^2 compute/output IO).
        out = out[:, :, ::stride, ::stride]
    return out


def _reference(x_nchw, w_dw, w_pw, *, stride, padding, dilation):
    Cin = x_nchw.shape[1]
    y = lax.conv_general_dilated(
        x_nchw, w_dw, window_strides=(stride, stride),
        padding=[(padding, padding), (padding, padding)],
        rhs_dilation=(dilation, dilation),
        dimension_numbers=("NCHW", "OIHW", "NCHW"),
        feature_group_count=Cin)
    z = lax.conv_general_dilated(
        y, w_pw, window_strides=(1, 1), padding="VALID",
        dimension_numbers=("NCHW", "OIHW", "NCHW"))
    return z


if __name__ == "__main__":
    # Module config: SeparableConv2d(in_channels=4, out_channels=8,
    #                                kernel_size=3, stride=1, padding=1,
    #                                dilation=1, bias=False)
    N, Cin, H, W = 2, 4, 16, 16
    Cout, K, stride, padding, dilation = 8, 3, 1, 1, 1

    key = jax.random.PRNGKey(0)
    kx, kdw, kpw = jax.random.split(key, 3)
    x = jax.random.normal(kx, (N, Cin, H, W), dtype=jnp.float32)
    w_dw = jax.random.normal(kdw, (Cin, 1, K, K), dtype=jnp.float32) * 0.1
    w_pw = jax.random.normal(kpw, (Cout, Cin, 1, 1), dtype=jnp.float32) * 0.1

    out = jax.block_until_ready(
        separable_conv2d(x, w_dw, w_pw, stride=stride,
                         padding=padding, dilation=dilation))
    ref = _reference(x, w_dw, w_pw, stride=stride,
                     padding=padding, dilation=dilation)
    assert out.shape == ref.shape == (N, Cout, H, W)
    assert float(jnp.max(jnp.abs(out - ref))) < 1e-4

    # Second config: exercises G=1 (no batch fold), odd channel counts and the
    # full-extent (non-128-multiple) output-block fallback path.
    N2, C2, H2, W2, Co2 = 1, 3, 12, 12, 5
    kx2, kd2, kp2 = jax.random.split(jax.random.PRNGKey(0), 3)
    x2 = jax.random.normal(kx2, (N2, C2, H2, W2), dtype=jnp.float32)
    wd2 = jax.random.normal(kd2, (C2, 1, K, K), dtype=jnp.float32) * 0.1
    wp2 = jax.random.normal(kp2, (Co2, C2, 1, 1), dtype=jnp.float32) * 0.1
    out2 = jax.block_until_ready(
        separable_conv2d(x2, wd2, wp2, stride=1, padding=1, dilation=1))
    ref2 = _reference(x2, wd2, wp2, stride=1, padding=1, dilation=1)
    assert out2.shape == ref2.shape
    assert float(jnp.max(jnp.abs(out2 - ref2))) < 1e-4

    print("KERNEL_OK")
</pallas_src>

<mosaic_0001>
module attributes {stable_mosaic.version = 11 : i64} {
  func.func @_sepconv_kernel(%arg0: i32, %arg1: i32, %arg2: memref<1x1x8x144xf32, #tpu.memory_space<vmem>>, %arg3: memref<1x1x8x38xf32, #tpu.memory_space<vmem>>, %arg4: memref<8x36xf32, #tpu.memory_space<vmem>>, %arg5: memref<2x8x128xf32, #tpu.memory_space<vmem>>) attributes {dimension_semantics = [#tpu.dimension_semantics<parallel>, #tpu.dimension_semantics<parallel>], iteration_bounds = array<i64: 1, 2>, scalar_prefetch = 0 : i64, scratch_operands = 0 : i64, tpu.core_type = #tpu.core_type<tc>, window_params = [{transform_indices = @transform_0, window_bounds = array<i64: 1, 1, 8, 144>}, {transform_indices = @transform_1, window_bounds = array<i64: 1, 1, 8, 38>}, {pipeline_mode = #tpu.pipeline_mode<synchronous>, transform_indices = @transform_2, window_bounds = array<i64: 8, 36>}, {transform_indices = @transform_3, window_bounds = array<i64: 2, 8, 128>}]} {
    %c0 = arith.constant 0 : index
    %c0_0 = arith.constant 0 : index
    %c0_1 = arith.constant 0 : index
    %c0_2 = arith.constant 0 : index
    %0 = vector.load %arg2[%c0, %c0_0, %c0_1, %c0_2] : memref<1x1x8x144xf32, #tpu.memory_space<vmem>>, vector<1x1x8x144xf32>
    %1 = vector.shape_cast %0 : vector<1x1x8x144xf32> to vector<8x144xf32>
    %c0_3 = arith.constant 0 : index
    %c0_4 = arith.constant 0 : index
    %c0_5 = arith.constant 0 : index
    %c0_6 = arith.constant 0 : index
    %2 = vector.load %arg3[%c0_3, %c0_4, %c0_5, %c0_6] : memref<1x1x8x38xf32, #tpu.memory_space<vmem>>, vector<1x1x8x38xf32>
    %3 = vector.shape_cast %2 : vector<1x1x8x38xf32> to vector<8x38xf32>
    %4 = tpu.concatenate %1, %3 in 1 : vector<8x144xf32>, vector<8x38xf32> -> vector<8x182xf32>
    %5 = vector.extract_strided_slice %4 {offsets = [0, 0], sizes = [4, 182], strides = [1, 1]} : vector<8x182xf32> to vector<4x182xf32>
    %6 = vector.extract_strided_slice %5 {offsets = [0, 0], sizes = [4, 144], strides = [1, 1]} : vector<4x182xf32> to vector<4x144xf32>
    %7 = vector.extract_strided_slice %5 {offsets = [0, 1], sizes = [4, 144], strides = [1, 1]} : vector<4x182xf32> to vector<4x144xf32>
    %8 = vector.extract_strided_slice %5 {offsets = [0, 2], sizes = [4, 144], strides = [1, 1]} : vector<4x182xf32> to vector<4x144xf32>
    %9 = vector.extract_strided_slice %5 {offsets = [0, 18], sizes = [4, 144], strides = [1, 1]} : vector<4x182xf32> to vector<4x144xf32>
    %10 = vector.extract_strided_slice %5 {offsets = [0, 19], sizes = [4, 144], strides = [1, 1]} : vector<4x182xf32> to vector<4x144xf32>
    %11 = vector.extract_strided_slice %5 {offsets = [0, 20], sizes = [4, 144], strides = [1, 1]} : vector<4x182xf32> to vector<4x144xf32>
    %12 = vector.extract_strided_slice %5 {offsets = [0, 36], sizes = [4, 144], strides = [1, 1]} : vector<4x182xf32> to vector<4x144xf32>
    %13 = vector.extract_strided_slice %5 {offsets = [0, 37], sizes = [4, 144], strides = [1, 1]} : vector<4x182xf32> to vector<4x144xf32>
    %14 = vector.extract_strided_slice %5 {offsets = [0, 38], sizes = [4, 144], strides = [1, 1]} : vector<4x182xf32> to vector<4x144xf32>
    %15 = tpu.concatenate %6, %7, %8, %9, %10, %11, %12, %13, %14 in 0 : vector<4x144xf32>, vector<4x144xf32>, vector<4x144xf32>, vector<4x144xf32>, vector<4x144xf32>, vector<4x144xf32>, vector<4x144xf32>, vector<4x144xf32>, vector<4x144xf32> -> vector<36x144xf32>
    %16 = vector.extract_strided_slice %4 {offsets = [4, 0], sizes = [4, 182], strides = [1, 1]} : vector<8x182xf32> to vector<4x182xf32>
    %17 = vector.extract_strided_slice %16 {offsets = [0, 0], sizes = [4, 144], strides = [1, 1]} : vector<4x182xf32> to vector<4x144xf32>
    %18 = vector.extract_strided_slice %16 {offsets = [0, 1], sizes = [4, 144], strides = [1, 1]} : vector<4x182xf32> to vector<4x144xf32>
    %19 = vector.extract_strided_slice %16 {offsets = [0, 2], sizes = [4, 144], strides = [1, 1]} : vector<4x182xf32> to vector<4x144xf32>
    %20 = vector.extract_strided_slice %16 {offsets = [0, 18], sizes = [4, 144], strides = [1, 1]} : vector<4x182xf32> to vector<4x144xf32>
    %21 = vector.extract_strided_slice %16 {offsets = [0, 19], sizes = [4, 144], strides = [1, 1]} : vector<4x182xf32> to vector<4x144xf32>
    %22 = vector.extract_strided_slice %16 {offsets = [0, 20], sizes = [4, 144], strides = [1, 1]} : vector<4x182xf32> to vector<4x144xf32>
    %23 = vector.extract_strided_slice %16 {offsets = [0, 36], sizes = [4, 144], strides = [1, 1]} : vector<4x182xf32> to vector<4x144xf32>
    %24 = vector.extract_strided_slice %16 {offsets = [0, 37], sizes = [4, 144], strides = [1, 1]} : vector<4x182xf32> to vector<4x144xf32>
    %25 = vector.extract_strided_slice %16 {offsets = [0, 38], sizes = [4, 144], strides = [1, 1]} : vector<4x182xf32> to vector<4x144xf32>
    %26 = tpu.concatenate %17, %18, %19, %20, %21, %22, %23, %24, %25 in 0 : vector<4x144xf32>, vector<4x144xf32>, vector<4x144xf32>, vector<4x144xf32>, vector<4x144xf32>, vector<4x144xf32>, vector<4x144xf32>, vector<4x144xf32>, vector<4x144xf32> -> vector<36x144xf32>
    %27 = tpu.concatenate %15, %26 in 1 : vector<36x144xf32>, vector<36x144xf32> -> vector<36x288xf32>
    %c0_7 = arith.constant 0 : index
    %c0_8 = arith.constant 0 : index
    %28 = vector.load %arg4[%c0_7, %c0_8] : memref<8x36xf32, #tpu.memory_space<vmem>>, vector<8x36xf32>
    %cst = arith.constant dense<0.000000e+00> : vector<8x288xf32>
    %29 = tpu.matmul %28, %27, %cst {dimension_numbers = #tpu.dot_dimension_numbers<[1], [0], [0], [1], [0, 0, 1, 1], [], []>} : vector<8x36xf32>, vector<36x288xf32>, vector<8x288xf32> -> vector<8x288xf32>
    %30 = vector.extract_strided_slice %29 {offsets = [0, 0], sizes = [8, 144], strides = [1, 1]} : vector<8x288xf32> to vector<8x144xf32>
    %31 = vector.extract_strided_slice %30 {offsets = [0, 0], sizes = [8, 16], strides = [1, 1]} : vector<8x144xf32> to vector<8x16xf32>
    %32 = vector.extract_strided_slice %30 {offsets = [0, 18], sizes = [8, 16], strides = [1, 1]} : vector<8x144xf32> to vector<8x16xf32>
    %33 = vector.extract_strided_slice %30 {offsets = [0, 36], sizes = [8, 16], strides = [1, 1]} : vector<8x144xf32> to vector<8x16xf32>
    %34 = vector.extract_strided_slice %30 {offsets = [0, 54], sizes = [8, 16], strides = [1, 1]} : vector<8x144xf32> to vector<8x16xf32>
    %35 = vector.extract_strided_slice %30 {offsets = [0, 72], sizes = [8, 16], strides = [1, 1]} : vector<8x144xf32> to vector<8x16xf32>
    %36 = vector.extract_strided_slice %30 {offsets = [0, 90], sizes = [8, 16], strides = [1, 1]} : vector<8x144xf32> to vector<8x16xf32>
    %37 = vector.extract_strided_slice %30 {offsets = [0, 108], sizes = [8, 16], strides = [1, 1]} : vector<8x144xf32> to vector<8x16xf32>
    %38 = vector.extract_strided_slice %30 {offsets = [0, 126], sizes = [8, 16], strides = [1, 1]} : vector<8x144xf32> to vector<8x16xf32>
    %39 = tpu.concatenate %31, %32, %33, %34, %35, %36, %37, %38 in 1 : vector<8x16xf32>, vector<8x16xf32>, vector<8x16xf32>, vector<8x16xf32>, vector<8x16xf32>, vector<8x16xf32>, vector<8x16xf32>, vector<8x16xf32> -> vector<8x128xf32>
    %c0_9 = arith.constant 0 : index
    %c0_10 = arith.constant 0 : index
    %c0_11 = arith.constant 0 : index
    %40 = vector.load %arg5[%c0_9, %c0_10, %c0_11] : memref<2x8x128xf32, #tpu.memory_space<vmem>>, vector<1x8x128xf32>
    %41 = vector.shape_cast %40 : vector<1x8x128xf32> to vector<8x128xf32>
    %42 = vector.shape_cast %39 : vector<8x128xf32> to vector<1x8x128xf32>
    tpu.vector_store %arg5[%c0_9, %c0_10, %c0_11], %42 {strides = array<i32>} : memref<2x8x128xf32, #tpu.memory_space<vmem>>, vector<1x8x128xf32>,
    %43 = vector.extract_strided_slice %29 {offsets = [0, 144], sizes = [8, 144], strides = [1, 1]} : vector<8x288xf32> to vector<8x144xf32>
    %44 = vector.extract_strided_slice %43 {offsets = [0, 0], sizes = [8, 16], strides = [1, 1]} : vector<8x144xf32> to vector<8x16xf32>
    %45 = vector.extract_strided_slice %43 {offsets = [0, 18], sizes = [8, 16], strides = [1, 1]} : vector<8x144xf32> to vector<8x16xf32>
    %46 = vector.extract_strided_slice %43 {offsets = [0, 36], sizes = [8, 16], strides = [1, 1]} : vector<8x144xf32> to vector<8x16xf32>
    %47 = vector.extract_strided_slice %43 {offsets = [0, 54], sizes = [8, 16], strides = [1, 1]} : vector<8x144xf32> to vector<8x16xf32>
    %48 = vector.extract_strided_slice %43 {offsets = [0, 72], sizes = [8, 16], strides = [1, 1]} : vector<8x144xf32> to vector<8x16xf32>
    %49 = vector.extract_strided_slice %43 {offsets = [0, 90], sizes = [8, 16], strides = [1, 1]} : vector<8x144xf32> to vector<8x16xf32>
    %50 = vector.extract_strided_slice %43 {offsets = [0, 108], sizes = [8, 16], strides = [1, 1]} : vector<8x144xf32> to vector<8x16xf32>
    %51 = vector.extract_strided_slice %43 {offsets = [0, 126], sizes = [8, 16], strides = [1, 1]} : vector<8x144xf32> to vector<8x16xf32>
    %52 = tpu.concatenate %44, %45, %46, %47, %48, %49, %50, %51 in 1 : vector<8x16xf32>, vector<8x16xf32>, vector<8x16xf32>, vector<8x16xf32>, vector<8x16xf32>, vector<8x16xf32>, vector<8x16xf32>, vector<8x16xf32> -> vector<8x128xf32>
    %c1 = arith.constant 1 : index
    %c0_12 = arith.constant 0 : index
    %c0_13 = arith.constant 0 : index
    %53 = vector.load %arg5[%c1, %c0_12, %c0_13] : memref<2x8x128xf32, #tpu.memory_space<vmem>>, vector<1x8x128xf32>
    %54 = vector.shape_cast %53 : vector<1x8x128xf32> to vector<8x128xf32>
    %55 = vector.shape_cast %52 : vector<8x128xf32> to vector<1x8x128xf32>
    tpu.vector_store %arg5[%c1, %c0_12, %c0_13], %55 {strides = array<i32>} : memref<2x8x128xf32, #tpu.memory_space<vmem>>, vector<1x8x128xf32>,
    return
  }
  func.func @transform_0(%arg0: i32, %arg1: i32) -> (i32, i32, i32, i32) {
    %c0_i32 = arith.constant 0 : i32
    %c0_i32_0 = arith.constant 0 : i32
    %c0_i32_1 = arith.constant 0 : i32
    return %arg0, %arg1, %c0_i32, %c0_i32_0 : i32, i32, i32, i32
  }
  func.func @transform_1(%arg0: i32, %arg1: i32) -> (i32, i32, i32, i32) {
    %c0_i32 = arith.constant 0 : i32
    %c0_i32_0 = arith.constant 0 : i32
    %c0_i32_1 = arith.constant 0 : i32
    return %arg0, %arg1, %c0_i32, %c0_i32_0 : i32, i32, i32, i32
  }
  func.func @transform_2(%arg0: i32, %arg1: i32) -> (i32, i32) {
    %c0_i32 = arith.constant 0 : i32
    %c0_i32_0 = arith.constant 0 : i32
    %c0_i32_1 = arith.constant 0 : i32
    return %c0_i32, %c0_i32_0 : i32, i32
  }
  func.func @transform_3(%arg0: i32, %arg1: i32) -> (i32, i32, i32) {
    %c0_i32 = arith.constant 0 : i32
    %c0_i32_0 = arith.constant 0 : i32
    return %arg0, %c0_i32, %arg1 : i32, i32, i32
  }
}

</mosaic_0001>

<bundles_post_ra>
// kernel: tpu_custom_call.1
= control target key start
LH: loop header
LB: loop body
LE: loop exit
PB: predicated region body
PF: predicated region fallthrough
CT: control target
= control target key end

     0   :  { %s1694_s0 = inlined_call_operand.hbm [shape: f32[1,2,8,144], index: 0, kind: input, shape index: {}]   ;;  %s1695_s1 = inlined_call_operand.hbm [shape: f32[1,2,8,38], index: 1, kind: input, shape index: {}]   ;;  %s1696_s2 = inlined_call_operand.hbm [shape: f32[8,36], index: 2, kind: input, shape index: {}]   ;;  %s1697_s3 = inlined_call_operand.hbm [shape: f32[2,8,256], index: 3, kind: output, shape index: {}]  }
   0x1   :  { %1702 = sst [smem:[#allocation13_spill]] %s1694_s0 }
   0x2   :  { %8 = vsyncpa [#allocation3], 0 }
   0x3   :  { %10 = vsyncpa [#allocation3 + $0x1], 0 }
   0x4   :  { %11 = vsyncpa [#allocation6], 0 }
   0x5   :  { %13 = vsyncpa [#allocation6 + $0x1], 0 }
   0x6   :  { %14 = vsyncpa [#allocation4], 0 }
   0x7   :  { %16 = vsyncpa [#allocation4 + $0x1], 0  ;;  %s1308_s12 = smov 0   ;;  %s1310_s13 = smov 0  }
   0x8   :  { %s1312_s14 = smov 0   ;;  %s1314_s15 = smov 0  }
   0x9   :  { %s1316_s16 = smov 0   ;;  %s1318_s17 = smov 0  }
   0xa LB: > { %s1339_s18 = sadd.s32 4294967295, %s1255_s17   ;;  %s824_s19 = sadd.s32 4294967294, %s1255_s17   ;;  %s1255_s17 = sphi %s1318_s17, %s22_s17   ;;  %s1251_s16 = sphi %s1316_s16, %s1726_s16   ;;  %s1247_s15 = sphi %s1314_s15, %s1725_s15   ;;  %s1243_s14 = sphi %s1312_s14, %s1724_s14   ;;  %s1239_s13 = sphi %s1310_s13, %s1723_s13   ;;  %s1235_s12 = sphi %s1308_s12, %s1722_s12  }
   0xb   : > { %s43_s20 = sadd.s32 1, %s1243_s14  ;;  %p50_p0 = scmp.ne.s32.totalorder %s1243_s14, %s1239_s13 }
   0xc   : > { %p56_p1 = scmp.ne.s32.totalorder %s1239_s13, %s1235_s12  ;;  %p1698_p2 = scmp.eq.s32.totalorder %s1339_s18, 0 }
   0xd   : > { %p131_p3 = scmp.eq.s32.totalorder %s1339_s18, 1  ;;  %p137_p4 = scmp.eq.s32.totalorder %s824_s19, 1 }
   0xe   : > { %p1351_p5 = por %p1698_p2, %p56_p1  ;;  %p825_p6 = scmp.ge.s32.totalorder %s1255_s17, 1 }
   0xf   : > { %p1359_p7 = por %p131_p3, %p50_p0  ;;  %p1363_p8 = por %p137_p4, %p56_p1 }
  0x10   : > { %s1703_s21 = scalar_select %p1351_p5, 1, 0 }
  0x11   : > { %s1704_s22 = scalar_select %p1359_p7, 1, 0 }
  0x12   : > { %s1705_s23 = scalar_select %p1363_p8, 1, 0 }
  0x13   : > { %p144_p9 = scmp.lt.s32.totalorder %s1255_s17, 3  ;;  %s1257_s25 = smov [#allocation7]  }
  0x14   : > { %s157_s26 = sshll.u32 %s1257_s25, 4  ;;  %s31_s27 = sadd.s32 1, %s1251_s16  ;;  %s158_s26 = int_to_ptr.vmem [resolvable:$true] %s157_s26 }
  0x15   : > { %p1369_p11 = pnand %p825_p6, %p144_p9  ;;  %p51_p13 = scmp.eq.s32.totalorder %s1255_s17, 0 }
  0x16   : > { %p1383_p1 = scmp.ge.s32.totalorder %s31_s27, 2  ;;  %s1396_s4 = sand.u32 1, %s1243_s14  }
  0x17   : > { %s1706_s24 = scalar_select %p1369_p11, 1, 0 }
  0x18   : > { %p892_p12 = pneg %p1369_p11  ;;  %p1390_p4 = por %p51_p13, %p50_p0 }
  0x19   : > { %s1708_s29 = scalar_select %p1383_p1, 1, 0 }
  0x1a   : > { %p1379_p3 = pnand %p892_p12, %p1698_p2  ;;  %s1077_s7 = scalar_lea.hbm %s1696_s2, 128 }
  0x1b   : > { %s1709_s30 = scalar_select %p1390_p4, 1, 0 }
  0x1c   : > { %p1078_p9 = scmp.ne.s32.totalorder %s1696_s2, %s1077_s7  ;;  %p1079_p12 = pneg %p1379_p3 }
  0x1d   : > { %p1084_p0 = scmp.lt.u32.totalorder %s1077_s7, %s1696_s2 }
  0x1e   : > { %p1080_p10 = pnand %p1079_p12, %p1078_p9 }
  0x20   : > { %p1081_p2 = pneg %p1080_p10 }
  0x22   : > { %p1086_p13 = pnand %p1084_p0, %p1081_p2 }
  0x24   : > { %1089 = shalt.err (!%p1086_p13)
}
  0x25   : > { %s1090_s19 = scalar_lea.vmem %s158_s26, 128  ;;  %p1098_p5 = scmp.lt.s32.totalorder %s158_s26, %s158_s26 }
  0x26   : > { %p1091_p6 = scmp.ne.s32.totalorder %s158_s26, %s1090_s19  ;;  %p1099_p11 = scmp.lt.s32.totalorder %s1090_s19, %s1090_s19 }
  0x28   : > { %p1093_p8 = pnand %p1091_p6, %p1079_p12  ;;  %p1100_p4 = por %p1099_p11, %p1098_p5 }
  0x2a   : > { %p1094_p7 = pneg %p1093_p8 }
  0x2c   : > { %p1101_p1 = pnand %p1100_p4, %p1094_p7 }
  0x2e   : > { %1104 = shalt.err (!%p1101_p1)
}
  0x2f   : > { %895 = dma.hbm_to_vmem [thread:$0]  (!%p1379_p3), %s1696_s2, 128, %s158_s26, [#allocation6]  }
  0x30   : > { %p1710_p2 = scmp.ne.s32.totalorder %s1708_s29, 0  ;;  %s828_s28 = sshll.u32 %s1396_s4, 4 }
  0x31   : > { %s848_s7 = sshll.u32 %s1251_s16, 8  ;;  %s1711_s0 = sld [smem:[#allocation13_spill]] }
  0x32   : > { %s1728_s27 = smov (%p1710_p2, %s31_s27), 0  ;;  %s172_s11 = scalar_lea.vmem [#allocation2], %s828_s28 }
  0x33   : > { %s39_s6 = ssub.s32 %s1251_s16, %s1728_s27  ;;  %s182_s19 = sshll.u32 %s172_s11, 4  ;;  %s1432_s19 = int_to_ptr.vmem [resolvable:$true] %s182_s19 }
  0x34   : > { %p41_p5 = scmp.eq.s32.totalorder %s39_s6, 0  ;;  %p1712_p7 = scmp.ne.s32.totalorder %s1709_s30, 0 }
  0x35   : > { %p1713_p8 = scmp.lt.s32.totalorder %s1255_s17, 2  ;;  %s189_s25 = sand.u32 1, %s1255_s17  }
  0x36   : > { %s1430_s26 = scalar_select %p41_p5, %s1243_s14, %s43_s20  }
  0x37   : > { %s1425_s10 = scalar_lea.hbm %s1711_s0, %s848_s7  ;;  %p1438_p10 = pnand %p1713_p8, %p1712_p7 }
  0x38   : > { %s831_s5 = sshll.u32 %s1396_s4, 3  ;;  %s169_s6 = scalar_lea.sflag [#allocation3], %s1396_s4 }
  0x39   : > { %s1105_s7 = scalar_lea.hbm %s1425_s10, 256  ;;  %p1107_p3 = pneg %p1438_p10 }
  0x3a   : > { %p1106_p11 = scmp.ne.s32.totalorder %s1425_s10, %s1105_s7  ;;  %s1110_s28 = scalar_lea.hbm %s1711_s0, 512 }
  0x3b   : > { %p1111_p6 = scmp.lt.u32.totalorder %s1425_s10, %s1711_s0  ;;  %p1112_p9 = scmp.lt.u32.totalorder %s1110_s28, %s1105_s7 }
  0x3c   : > { %p1108_p1 = pnand %p1107_p3, %p1106_p11  ;;  %p1114_p0 = scmp.lt.u32.totalorder %s1105_s7, %s1425_s10 }
  0x3d   : > { %p1113_p12 = por %p1112_p9, %p1111_p6 }
  0x3e   : > { %p1109_p4 = pneg %p1108_p1 }
  0x3f   : > { %p1115_p13 = por %p1114_p0, %p1113_p12 }
  0x41   : > { %p1116_p2 = pnand %p1115_p13, %p1109_p4 }
  0x43   : > { %1119 = shalt.err (!%p1116_p2)
}
  0x44   : > { %s1120_s11 = scalar_lea.vmem %s1432_s19, 256  ;;  %s1258_s20 = smov [#allocation2]  }
  0x45   : > { %p1121_p5 = scmp.ne.s32.totalorder %s1432_s19, %s1120_s11  ;;  %s1125_s30 = sshll.u32 %s1258_s20, 4  ;;  %s1126_s30 = int_to_ptr.vmem [resolvable:$false] %s1125_s30 }
  0x46   : > { %s1127_s8 = scalar_lea.vmem %s1126_s30, 512  ;;  %p1128_p11 = scmp.lt.s32.totalorder %s1432_s19, %s1126_s30 }
  0x47   : > { %p1123_p7 = pnand %p1121_p5, %p1107_p3  ;;  %p1129_p1 = scmp.lt.s32.totalorder %s1127_s8, %s1120_s11 }
  0x49   : > { %p1124_p8 = pneg %p1123_p7  ;;  %p1130_p6 = por %p1129_p1, %p1128_p11 }
  0x4b   : > { %p1131_p9 = pnand %p1130_p6, %p1124_p8 }
  0x4d   : > { %1134 = shalt.err (!%p1131_p9)
}
  0x4e   : > { %899 = dma.hbm_to_vmem [thread:$0]  (!%p1438_p10), %s1425_s10, 256, %s1432_s19, %s169_s6  }
  0x4f   : > { %s832_s7 = sshll.u32 %s1251_s16, 7  ;;  %s193_s11 = scalar_lea.vmem [#allocation5], %s831_s5 }
  0x50   : > { %s1474_s20 = scalar_lea.hbm %s1695_s1, %s832_s7  ;;  %s202_s30 = sshll.u32 %s193_s11, 4  ;;  %s203_s30 = int_to_ptr.vmem [resolvable:$true] %s202_s30 }
  0x51   : > { %s190_s8 = scalar_lea.sflag [#allocation6], %s189_s25  ;;  %s1135_s0 = scalar_lea.hbm %s1474_s20, 128 }
  0x52   : > { %p1136_p4 = scmp.ne.s32.totalorder %s1474_s20, %s1135_s0  ;;  %s1140_s6 = scalar_lea.hbm %s1695_s1, 256 }
  0x53   : > { %p1141_p13 = scmp.lt.u32.totalorder %s1474_s20, %s1695_s1  ;;  %p1142_p2 = scmp.lt.u32.totalorder %s1140_s6, %s1135_s0 }
  0x54   : > { %p1138_p12 = pnand %p1136_p4, %p1107_p3  ;;  %p1144_p7 = scmp.lt.u32.totalorder %s1135_s0, %s1474_s20 }
  0x55   : > { %p1143_p5 = por %p1142_p2, %p1141_p13 }
  0x56   : > { %p1139_p0 = pneg %p1138_p12 }
  0x57   : > { %p1145_p8 = por %p1144_p7, %p1143_p5 }
  0x59   : > { %p1146_p11 = pnand %p1145_p8, %p1139_p0 }
  0x5b   : > { %1149 = shalt.err (!%p1146_p11)
}
  0x5c   : > { %s1150_s25 = scalar_lea.vmem %s203_s30, 128  ;;  %s1259_s5 = smov [#allocation5]  }
  0x5d   : > { %p1151_p1 = scmp.ne.s32.totalorder %s203_s30, %s1150_s25  ;;  %s1155_s28 = sshll.u32 %s1259_s5, 4  ;;  %s1156_s28 = int_to_ptr.vmem [resolvable:$false] %s1155_s28 }
  0x5e   : > { %s1157_s9 = scalar_lea.vmem %s1156_s28, 256  ;;  %p1158_p4 = scmp.lt.s32.totalorder %s203_s30, %s1156_s28 }
  0x5f   : > { %p1153_p6 = pnand %p1151_p1, %p1107_p3  ;;  %p1159_p12 = scmp.lt.s32.totalorder %s1157_s9, %s1150_s25 }
  0x61   : > { %p1154_p9 = pneg %p1153_p6  ;;  %p1160_p2 = por %p1159_p12, %p1158_p4 }
  0x63   : > { %p1161_p13 = pnand %p1160_p2, %p1154_p9 }
  0x65   : > { %1164 = shalt.err (!%p1161_p13)
}
  0x66   : > { %902 = dma.hbm_to_vmem [thread:$0]  (!%p1438_p10), %s1474_s20, 128, %s203_s30, %s190_s8  }
  0x67   : > { %p1715_p0 = scmp.ne.s32.totalorder %s1706_s24, 0 }
  0x68   : > { %s1502_s0 = sand.u32 (!%p1715_p0), 1, %s1239_s13   ;;  %p1716_p3 = scmp.ne.s32.totalorder (!%p1715_p0), %s1703_s21, 0 }
  0x69   : > { %211 = sbr.rel (%p1715_p0) target bundleno = 876 (0x36c), region = 32  ;;  %s834_s11 = sshll.u32 (!%p1715_p0), %s1502_s0, 4 }
  0x6a   : > { %s214_s10 = scalar_lea.sflag (!%p1715_p0), [#allocation3], %s1502_s0  ;;  %s217_s19 = scalar_lea.vmem (!%p1715_p0), [#allocation2], %s834_s11 }
  0x70   : > { %1218 = dma.done.wait (%p1716_p3), %s214_s10, 256  }
  0x71   : > { %1220 = vsyncadd (%p1716_p3), %s214_s10, 4294967040  ;;  %s222_s24 = sand.u32 1, %s1339_s18   ;;  %s835_s29 = sshll.u32 %s1502_s0, 3 }
  0x72   : > { %s223_s20 = scalar_lea.sflag [#allocation6], %s222_s24  ;;  %s226_s30 = scalar_lea.vmem [#allocation5], %s835_s29 }
  0x73   : > { %1222 = dma.done.wait (%p1716_p3), %s223_s20, 128  }
  0x74   : > { %1224 = vsyncadd (%p1716_p3), %s223_s20, 4294967168  ;;  %p1717_p10 = scmp.eq.s32.totalorder %s1339_s18, 0 }
  0x76   : > { %1226 = dma.done.wait (%p1717_p10), [#allocation6], 128   ;;  %p1718_p5 = pmov %p1717_p10 }
  0x77   : > { %v261_v0 = vld [vmem:[%s226_s30] sm:$0xff]  ;;  %s1260_s8 = smov 16   ;;  %vm266_vm0 = vcmask 130048   ;;  %v260_v1 = vld [vmem:[%s217_s19 + $0x8] sm:$0xff]  ;;  %s1261_s18 = smov 110   ;;  %vm276_vm1 = vcmask 1039360  }
  0x78   : > { %1228 = vsyncadd (%p1718_p5), [#allocation6], 4294967168  ;;  %263 = vrot.lane.b32.xlu0 %v261_v0, %s1260_s8  ;;  %v1523_v2 = vld [vmem:[%s217_s19] sm:$0xff]  ;;  %s1262_s21 = smov 127   ;;  %s1263_s6 = smov 108   ;;  %vm292_vm2 = vcmask 900096  }
  0x79   : > { %v1534_v7 = vrot.slane %v1523_v2, 4  ;;  %s1264_s4 = smov 109   ;;  %s1265_s7 = smov 92   ;;  %vm308_vm3 = vcmask 883712   ;;  %vm335_vm4 = vcmask 1043456   ;;  %vm284_vm5 = vcmask 1031168  }
  0x7a   : > { %s1266_s25 = smov 126   ;;  %s1267_s5 = smov 90   ;;  %vm300_vm6 = vcmask 891904   ;;  %vm316_vm7 = vcmask 752640   ;;  %v1269_v32 = vmov 0.0|0.0   ;;  %vm324_vm8 = vcmask 744448  }
  0x7b   : > { %s1268_s28 = smov 91   ;;  %876 = vmatprep.subr.bf16.mxu1 %v1269_v32  ;;  %v1270_v52 = vmov 0.0   ;;  %vm1271_vm9 = vmmov 0   ;;  %vm332_vm10 = vcmask 736256   ;;  %vm456_vm11 = vcmask 293888   ;;  %s1272_s9 = smov 124  }
  0x7c   : > { %531 = vmatprep.mubr.f32.mxu0 %v1270_v52  ;;  %865 = vmatprep.mubr.msk.f32.mxu1 %vm1271_vm9, %v1270_v52  ;;  %s1273_s10 = smov 100   ;;  %s1274_s19 = smov 122   ;;  %vm636_vm12 = vcmask 261120   ;;  %vm638_vm13 = vcmask 392192   ;;  %vm640_vm14 = vcmask 523264   ;;  %vm642_vm15 = vcmask 654336  }
  0x7d   : > { %s1275_s24 = smov 120   ;;  %s1276_s29 = smov 114  }
  0x7e   : > { %s1277_s20 = smov 118   ;;  %s1278_s30 = smov 116  }
  0x7f   : > { %p1719_p8 = scmp.ne.s32.totalorder %s1704_s22, 0 }
  0xea   : > { %v264_v3 = vpop.permute.xlu0 %263 }
  0xeb   : > { %v1526_v4 = vsel %vm266_vm0, %v260_v1, %v264_v3 }
  0xec   : > { %v1529_v5 = vrot.slane %v1526_v4, 4  ;;  %v992_v6 = vpack.i.bf16 %v1526_v4, %v1523_v2  ;;  %v1027_v9 = vpack.i.bf16 %v1523_v2, %v1526_v4 }
  0xee   : > { %993 = vrot.lane.b32.xlu1 %v992_v6, %s1261_s18  ;;  %988 = vrot.lane.b32.xlu0 %v992_v6, %s1262_s21  ;;  %v1007_v8 = vpack.i.bf16 %v1529_v5, %v1534_v7  ;;  %v1037_v10 = vpack.i.bf16 %v1534_v7, %v1529_v5 }
  0xf2   : > { %998 = vrot.lane.b32.xlu1 %v992_v6, %s1263_s6  ;;  %1008 = vrot.lane.b32.xlu0 %v1007_v8, %s1264_s4 }
  0xf6   : > { %1013 = vrot.lane.b32.xlu0 %v1007_v8, %s1265_s7  ;;  %1003 = vrot.lane.b32.xlu1 %v1007_v8, %s1266_s25 }
  0xfa   : > { %395 = vrot.lane.b32.xlu0 %v1534_v7, %s1267_s5  ;;  %1018 = vrot.lane.b32.xlu1 %v992_v6, %s1268_s28 }
  0xfe   : > { %1028 = vrot.lane.b32.xlu0 %v1027_v9, %s1264_s4  ;;  %397 = vrot.lane.b32.xlu1 %v1529_v5, %s1267_s5  ;;  %s1281_s4 = smov 104  }
 0x102   : > { %1033 = vrot.lane.b32.xlu0 %v1027_v9, %s1265_s7  ;;  %1023 = vrot.lane.b32.xlu1 %v1027_v9, %s1266_s25  ;;  %s1282_s7 = smov 102  }
 0x106   : > { %1038 = vrot.lane.b32.xlu0 %v1037_v10, %s1262_s21  ;;  %1048 = vrot.lane.b32.xlu1 %v1037_v10, %s1263_s6  ;;  %s1280_s21 = smov 106  }
 0x10a   : > { %1043 = vrot.lane.b32.xlu0 %v1037_v10, %s1261_s18  ;;  %1053 = vrot.lane.b32.xlu1 %v1037_v10, %s1268_s28 }
 0x160   : > { %v994_v11 = vpop.permute.xlu1 %993  ;;  %v989_v12 = vpop.permute.xlu0 %988 }
 0x161   : > { %v991_v13 = vunpack.i.h.bf16 %v989_v12  ;;  %v990_v14 = vunpack.i.l.bf16 %v989_v12  ;;  %v996_v17 = vunpack.i.h.bf16 %v994_v11  ;;  %v995_v18 = vunpack.i.l.bf16 %v994_v11 }
 0x163   : > { %v350_v19 = vsel %vm276_vm1, %v990_v14, %v991_v13  ;;  %v364_v28 = vsel %vm292_vm2, %v995_v18, %v996_v17  ;;  %v401_v49 = vsel %vm335_vm4, %v1529_v5, %v991_v13 }
 0x164   : > { %v999_v15 = vpop.permute.xlu1 %998  ;;  %v1009_v16 = vpop.permute.xlu0 %1008  ;;  %v400_v36 = vsel %vm335_vm4, %v1534_v7, %v350_v19 }
 0x165   : > { %v1001_v20 = vunpack.i.h.bf16 %v999_v15  ;;  %v1000_v21 = vunpack.i.l.bf16 %v999_v15  ;;  %v1011_v24 = vunpack.i.h.bf16 %v1009_v16  ;;  %v1010_v25 = vunpack.i.l.bf16 %v1009_v16 }
 0x167   : > { %v378_v33 = vsel %vm308_vm3, %v1000_v21, %v1001_v20  ;;  %v371_v38 = vsel %vm300_vm6, %v1010_v25, %v1011_v24  ;;  %v405_v56 = vsel %vm335_vm4, %v1011_v24, %v1001_v20 }
 0x168   : > { %v1014_v22 = vpop.permute.xlu0 %1013  ;;  %v1004_v23 = vpop.permute.xlu1 %1003  ;;  %v404_v47 = vsel %vm335_vm4, %v371_v38, %v378_v33 }
 0x169   : > { %v1006_v26 = vunpack.i.h.bf16 %v1004_v23  ;;  %v1005_v27 = vunpack.i.l.bf16 %v1004_v23  ;;  %v1016_v29 = vunpack.i.h.bf16 %v1014_v22  ;;  %v1015_v30 = vunpack.i.l.bf16 %v1014_v22 }
 0x16b   : > { %v357_v31 = vsel %vm284_vm5, %v1005_v27, %v1006_v26  ;;  %v403_v42 = vsel %vm335_vm4, %v1006_v26, %v996_v17  ;;  %v385_v43 = vsel %vm316_vm7, %v1015_v30, %v1016_v29 }
 0x16c   : > { %v396_v34 = vpop.permute.xlu0 %395  ;;  %v1019_v35 = vpop.permute.xlu1 %1018  ;;  %v402_v37 = vsel %vm335_vm4, %v357_v31, %v364_v28  ;;  %v1062_v51 = vpack.i.bf16 %v403_v42, %v401_v49 }
 0x16d   : > { %v1021_v39 = vunpack.i.h.bf16 %v1019_v35  ;;  %v1020_v40 = vunpack.i.l.bf16 %v1019_v35  ;;  %v1057_v41 = vpack.i.bf16 %v402_v37, %v400_v36 }
 0x16f   : > { %v392_v44 = vsel %vm324_vm8, %v1020_v40, %v1021_v39  ;;  %1058 = vrot.lane.b32.xlu1 %v1057_v41, %s1260_s8  ;;  %v407_v53 = vsel %vm335_vm4, %v1016_v29, %v1021_v39 }
 0x170   : > { %v1565_v45 = vpop.permute.xlu0 %1028  ;;  %v398_v46 = vpop.permute.xlu1 %397  ;;  %v406_v48 = vsel %vm335_vm4, %v385_v43, %v392_v44  ;;  %v1072_v57 = vpack.i.bf16 %v407_v53, %v405_v56 }
 0x171   : > { %v1067_v50 = vpack.i.bf16 %v406_v48, %v404_v47  ;;  %v1031_v58 = vunpack.i.h.bf16 %v1565_v45  ;;  %v1030_v59 = vunpack.i.l.bf16 %v1565_v45  ;;  %v399_v6 = vsel %vm332_vm10, %v396_v34, %v398_v46 }
 0x173   : > { %1068 = vrot.lane.b32.xlu0 %v1067_v50, %s1260_s8  ;;  %1063 = vrot.lane.b32.xlu1 %v1062_v51, %s1260_s8  ;;  %v301_v3 = vsel %vm300_vm6, %v1031_v58, %v1030_v59 }
 0x174   : > { %v1034_v54 = vpop.permute.xlu0 %1033  ;;  %v1024_v55 = vpop.permute.xlu1 %1023 }
 0x175   : > { %v1036_v5 = vunpack.i.h.bf16 %v1034_v54  ;;  %v1035_v7 = vunpack.i.l.bf16 %v1034_v54  ;;  %v1026_v8 = vunpack.i.h.bf16 %v1024_v55  ;;  %v1025_v9 = vunpack.i.l.bf16 %v1024_v55 }
 0x177   : > { %330 = vrot.lane.b32.xlu0 %v1526_v4, %s1267_s5  ;;  %1073 = vrot.lane.b32.xlu1 %v1072_v57, %s1260_s8  ;;  %v317_v19 = vsel %vm316_vm7, %v1036_v5, %v1035_v7  ;;  %v285_v21 = vsel %vm284_vm5, %v1026_v8, %v1025_v9 }
 0x178   : > { %v1039_v60 = vpop.permute.xlu0 %1038  ;;  %v1049_v61 = vpop.permute.xlu1 %1048 }
 0x179   : > { %v1041_v62 = vunpack.i.h.bf16 %v1039_v60  ;;  %v1040_v63 = vunpack.i.l.bf16 %v1039_v60  ;;  %v1051_v0 = vunpack.i.h.bf16 %v1049_v61  ;;  %v1050_v1 = vunpack.i.l.bf16 %v1049_v61  ;;  %v455_v61 = vld [vmem:[#allocation7] sm:$0xff] }
 0x17b   : > { %v309_v10 = vsel %vm308_vm3, %v1051_v0, %v1050_v1  ;;  %432 = vrot.lane.b32.xlu0 %v399_v6, %s1260_s8  ;;  %328 = vrot.lane.b32.xlu1 %v1523_v2, %s1267_s5  ;;  %v277_v13 = vsel %vm276_vm1, %v1041_v62, %v1040_v63  ;;  %v337_v31 = vsel %vm335_vm4, %v1526_v4, %v1040_v63  ;;  %vm644_vm1 = vcmask 785408   ;;  %s845_s5 = sshll.u32 %s1247_s15, 7  ;;  %s688_s15 = scalar_lea.sflag [#allocation4], %s1502_s0 }
 0x17c   : > { %v1044_v11 = vpop.permute.xlu0 %1043  ;;  %v1054_v12 = vpop.permute.xlu1 %1053  ;;  %v340_v14 = vsel %vm335_vm4, %v301_v3, %v309_v10  ;;  %v336_v23 = vsel %vm335_vm4, %v1523_v2, %v277_v13  ;;  %v341_v42 = vsel %vm335_vm4, %v1030_v59, %v1050_v1  ;;  %vm646_vm3 = vcmask 916480  }
 0x17d   : > { %v1046_v15 = vunpack.i.h.bf16 %v1044_v11  ;;  %v1045_v16 = vunpack.i.l.bf16 %v1044_v11  ;;  %v1056_v17 = vunpack.i.h.bf16 %v1054_v12  ;;  %v1055_v18 = vunpack.i.l.bf16 %v1054_v12 }
 0x17f   : > { %v325_v20 = vsel %vm324_vm8, %v1056_v17, %v1055_v18  ;;  %434 = vrot.lane.b32.xlu0 %v398_v46, %s1260_s8  ;;  %v293_v22 = vsel %vm292_vm2, %v1046_v15, %v1045_v16  ;;  %v339_v33 = vsel %vm335_vm4, %v1025_v9, %v1045_v16  ;;  %v343_v43 = vsel %vm335_vm4, %v1035_v7, %v1055_v18  ;;  %s1279_s8 = smov 112  }
 0x180   : > { %v338_v24 = vsel %vm335_vm4, %v285_v21, %v293_v22  ;;  %v342_v25 = vsel %vm335_vm4, %v317_v19, %v325_v20  ;;  %vm632_vm2 = vcmask 932864  }
 0x181   : > { %v870_v26 = vpack.c.bf16 %v338_v24, %v336_v23  ;;  %v874_v27 = vpack.c.bf16 %v342_v25, %v340_v14 }
 0x1e1   : > { %v1059_v28 = vpop.permute.xlu1 %1058 }
 0x1e2   : > { %v1061_v29 = vunpack.i.h.bf16 %v1059_v28  ;;  %v1060_v30 = vunpack.i.l.bf16 %v1059_v28 }
 0x1e4   : > { %v450_v34 = vsel %vm266_vm0, %v337_v31, %v1060_v30  ;;  %v451_v35 = vsel %vm266_vm0, %v339_v33, %v1061_v29 }
 0x1e5   : > { %v1069_v36 = vpop.permute.xlu0 %1068  ;;  %v1064_v2 = vpop.permute.xlu1 %1063  ;;  %v868_v37 = vpack.c.bf16 %v451_v35, %v450_v34 }
 0x1e6   : > { %v1071_v38 = vunpack.i.h.bf16 %v1069_v36  ;;  %v1070_v39 = vunpack.i.l.bf16 %v1069_v36  ;;  %v1066_v40 = vunpack.i.h.bf16 %v1064_v2  ;;  %v1065_v41 = vunpack.i.l.bf16 %v1064_v2 }
 0x1e7   : > { %869 = vmatprep.subr.bf16.mxu0 %v868_v37 }
 0x1e8   : > { %871 = vmatpush1.bf16.msra.mxu0 %v870_v26  ;;  %v452_v4 = vsel %vm266_vm0, %v341_v42, %v1070_v39  ;;  %v453_v44 = vsel %vm266_vm0, %v343_v43, %v1071_v38  ;;  %v436_v45 = vsel %vm266_vm0, %v1060_v30, %v1065_v41  ;;  %v437_v46 = vsel %vm266_vm0, %v1061_v29, %v1066_v40 }
 0x1e9   : > { %v331_v47 = vpop.permute.xlu0 %330  ;;  %v1074_v48 = vpop.permute.xlu1 %1073  ;;  %v872_v49 = vpack.c.bf16 %v453_v44, %v452_v4  ;;  %v877_v50 = vpack.c.bf16 %v437_v46, %v436_v45 }
 0x1ea   : > { %v1076_v51 = vunpack.i.h.bf16 %v1074_v48  ;;  %v1075_v53 = vunpack.i.l.bf16 %v1074_v48 }
 0x1eb   : > { %873 = vmatprep.subr.bf16.mxu0 %v872_v49  ;;  %878 = vmatpush3.bf16.msra.mxu1 %v877_v50 }
 0x1ec   : > { %875 = vmatpush1.bf16.msra.mxu0 %v874_v27  ;;  %879 = vmatprep.subr.bf16.mxu1 %v1269_v32  ;;  %v438_v54 = vsel %vm266_vm0, %v1070_v39, %v1075_v53  ;;  %v439_v55 = vsel %vm266_vm0, %v1071_v38, %v1076_v51 }
 0x1ed   : > { %v433_v56 = vpop.permute.xlu0 %432  ;;  %v329_v57 = vpop.permute.xlu1 %328  ;;  %v880_v58 = vpack.c.bf16 %v439_v55, %v438_v54 }
 0x1ee   : > { %v454_v59 = vsel %vm266_vm0, %v331_v47, %v433_v56  ;;  %v333_v60 = vsel %vm332_vm10, %v329_v57, %v331_v47 }
 0x1ef   : > { %838 = vmatprep.subr.msk.mxu0 %vm335_vm4, %v454_v59  ;;  %881 = vmatpush3.bf16.msra.mxu1 %v880_v58 }
 0x1f0   : > { %839 = vmatpush1.msk.msra.mxu0 %vm335_vm4, %v333_v60  ;;  %863 = vmatprep.subr.mxu1 %v1270_v52 }
 0x1f1   : > { %v435_v32 = vpop.permute.xlu0 %434  ;;  %840 = vmatmul.mubr.msk.f32.vlgmr.msra.gmra.mrb[0].mxu0 %vm456_vm11, %v455_v61 }
 0x1f2   : > { %v440_v62 = vsel %vm266_vm0, %v433_v56, %v435_v32 }
 0x1f3   : > { %864 = vmatpush3.msk.msra.mxu1 %vm335_vm4, %v440_v62 }
 0x1f4   : > { %866 = vmatmul.mubr.msk.f32.vlgmr.msra.gmra.mrb[0].mxu1 %vm456_vm11, %v455_v61 }
 0x2c4   : > { %v533_v63 = vpop.f32.mrb[0].mxu0 }
 0x2c5   : > { %612 = vrot.lane.b32.xlu0 %v533_v63, %s1272_s9  ;;  %v535_v0 = vpop.f32.mrb[1].mxu0  ;;  %s1643_s9 = scalar_lea.hbm %s1697_s3, %s845_s5 }
 0x2c7   : > { %v604_v1 = vpop.f32.mrb[0].mxu1 }
 0x2c8   : > { %670 = vrot.lane.b32.xlu1 %v604_v1, %s1273_s10  ;;  %v867_v3 = vpop.f32.mrb[1].mxu1 }
 0x2c9   : > { %615 = vrot.lane.b32.xlu0 %v533_v63, %s1274_s19  ;;  %s1284_s19 = smov [#allocation8]  }
 0x2cc   : > { %609 = vrot.lane.b32.xlu1 %v533_v63, %s1266_s25  ;;  %s1283_s25 = smov 98  }
 0x2cd   : > { %618 = vrot.lane.b32.xlu0 %v533_v63, %s1275_s24  ;;  %s1169_s24 = sshll.u32 %s1284_s19, 4  ;;  %s1170_s24 = int_to_ptr.vmem [resolvable:$false] %s1169_s24 }
 0x2d0   : > { %628 = vrot.lane.b32.xlu1 %v533_v63, %s1276_s29 }
 0x2d1   : > { %621 = vrot.lane.b32.xlu0 %v533_v63, %s1277_s20 }
 0x2d4   : > { %652 = vrot.lane.b32.xlu1 %v535_v0, %s1261_s18  ;;  %s257_s18 = scalar_lea.vmem [#allocation8], %s834_s11 }
 0x2d5   : > { %624 = vrot.lane.b32.xlu0 %v533_v63, %s1278_s30 }
 0x2d8   : > { %655 = vrot.lane.b32.xlu1 %v535_v0, %s1263_s6  ;;  %s703_s6 = sshll.u32 %s257_s18, 4  ;;  %s1638_s6 = int_to_ptr.vmem [resolvable:$true] %s703_s6 }
 0x2d9   : > { %649 = vrot.lane.b32.xlu0 %v535_v0, %s1279_s8  ;;  %p1172_p6 = scmp.lt.s32.totalorder %s1638_s6, %s1170_s24 }
 0x2dc   : > { %658 = vrot.lane.b32.xlu1 %v535_v0, %s1280_s21 }
 0x2dd   : > { %668 = vrot.lane.b32.xlu0 %v535_v0, %s1273_s10  ;;  %s1165_s10 = scalar_lea.vmem %s1638_s6, 256 }
 0x2de   : > { %p1166_p7 = scmp.ne.s32.totalorder %s1638_s6, %s1165_s10 }
 0x2e0   : > { %661 = vrot.lane.b32.xlu1 %v535_v0, %s1281_s4  ;;  %p1167_p11 = pnand %p1166_p7, %p1719_p8 }
 0x2e1   : > { %630 = vrot.lane.b32.xlu0 %v535_v0, %s1276_s29  ;;  %s1171_s29 = scalar_lea.vmem %s1170_s24, 512 }
 0x2e2   : > { %p1168_p1 = pneg %p1167_p11  ;;  %p1173_p9 = scmp.lt.s32.totalorder %s1171_s29, %s1165_s10 }
 0x2e4   : > { %664 = vrot.lane.b32.xlu1 %v535_v0, %s1282_s7  ;;  %p1174_p4 = por %p1173_p9, %p1172_p6 }
 0x2e6   : > { %p1175_p12 = pnand %p1174_p4, %p1168_p1 }
 0x2e8   : > { %675 = vrot.lane.b32.xlu1 %v604_v1, %s1283_s25 }
 0x337   : > { %v613_v52 = vpop.permute.xlu0 %612 }
 0x33a   : > { %v671_v5 = vpop.permute.xlu1 %670 }
 0x33b   : > { %v616_v6 = vpop.permute.xlu0 %615 }
 0x33e   : > { %v610_v7 = vpop.permute.xlu1 %609 }
 0x33f   : > { %v619_v8 = vpop.permute.xlu0 %618  ;;  %v635_v12 = vsel %vm266_vm0, %v533_v63, %v610_v7 }
 0x340   : > { %v637_v14 = vsel %vm636_vm12, %v635_v12, %v613_v52 }
 0x341   : > { %v639_v17 = vsel %vm638_vm13, %v637_v14, %v616_v6 }
 0x342   : > { %v629_v9 = vpop.permute.xlu1 %628  ;;  %v641_v21 = vsel %vm640_vm14, %v639_v17, %v619_v8 }
 0x343   : > { %v622_v10 = vpop.permute.xlu0 %621 }
 0x344   : > { %v643_v24 = vsel %vm642_vm15, %v641_v21, %v622_v10 }
 0x346   : > { %v653_v11 = vpop.permute.xlu1 %652 }
 0x347   : > { %v625_v13 = vpop.permute.xlu0 %624 }
 0x348   : > { %v645_v26 = vsel %vm644_vm1, %v643_v24, %v625_v13 }
 0x34a   : > { %v656_v15 = vpop.permute.xlu1 %655 }
 0x34b   : > { %v650_v16 = vpop.permute.xlu0 %649 }
 0x34c   : > { %v678_v19 = vsel %vm266_vm0, %v650_v16, %v653_v11  ;;  %vm672_vm0 = vcmask 818176  }
 0x34d   : > { %v679_v22 = vsel %vm636_vm12, %v678_v19, %v656_v15 }
 0x34e   : > { %v659_v18 = vpop.permute.xlu1 %658 }
 0x34f   : > { %v669_v20 = vpop.permute.xlu0 %668  ;;  %v680_v28 = vsel %vm638_vm13, %v679_v22, %v659_v18 }
 0x350   : > { %v673_v34 = vsel %vm672_vm0, %v669_v20, %v671_v5 }
 0x352   : > { %v662_v23 = vpop.permute.xlu1 %661 }
 0x353   : > { %v631_v25 = vpop.permute.xlu0 %630  ;;  %v681_v30 = vsel %vm640_vm14, %v680_v28, %v662_v23 }
 0x354   : > { %v633_v27 = vsel %vm632_vm2, %v629_v9, %v631_v25 }
 0x355   : > { %v647_v29 = vsel %vm646_vm3, %v645_v26, %v633_v27 }
 0x356   : > { %648 = vst [vmem:[%s257_s18] sm:$0xff] %v647_v29  ;;  %v665_v31 = vpop.permute.xlu1 %664 }
 0x357   : > { %v682_v33 = vsel %vm642_vm15, %v681_v30, %v665_v31 }
 0x358   : > { %v683_v35 = vsel %vm644_vm1, %v682_v33, %v673_v34 }
 0x35a   : > { %v676_v36 = vpop.permute.xlu1 %675 }
 0x35b   : > { %v684_v2 = vsel %vm646_vm3, %v683_v35, %v676_v36 }
 0x35c   : > { %843 = vst [vmem:[%s257_s18 + $0x8] sm:$0xff] %v684_v2 }
 0x35d   : > { %1178 = shalt.err (!%p1175_p12)
}
 0x35e   : > { %s1179_s20 = scalar_lea.hbm %s1643_s9, 256  ;;  %s1183_s21 = scalar_lea.hbm %s1697_s3, 512 }
 0x35f   : > { %p1180_p2 = scmp.ne.s32.totalorder %s1643_s9, %s1179_s20  ;;  %p1184_p3 = scmp.lt.u32.totalorder %s1643_s9, %s1697_s3 }
 0x360   : > { %p1185_p10 = scmp.lt.u32.totalorder %s1183_s21, %s1179_s20  ;;  %p1187_p7 = scmp.lt.u32.totalorder %s1179_s20, %s1643_s9 }
 0x361   : > { %p1181_p13 = pnand %p1180_p2, %p1719_p8 }
 0x362   : > { %p1186_p5 = por %p1185_p10, %p1184_p3 }
 0x363   : > { %p1182_p0 = pneg %p1181_p13 }
 0x364   : > { %p1188_p11 = por %p1187_p7, %p1186_p5 }
 0x366   : > { %p1189_p1 = pnand %p1188_p11, %p1182_p0 }
 0x368   : > { %1192 = shalt.err (!%p1189_p1)
}
 0x369   : > { %s1285_s25 = smov 128   ;;  %s1286_s18 = smov 256  }
 0x36a   : > { %s1287_s5 = smov 8  }
 0x36b   : > { %890 = dma.vmem_to_hbm [thread:$0]  (%p1719_p8), %s1638_s6, 256, %s1643_s9, %s688_s15, %s1285_s25, %s1286_s18, %s1287_s5  }
 0x36c PF: > { %s718_s11 = sand.u32 1, %s1235_s12   ;;  %p1720_p6 = scmp.ne.s32.totalorder %s1705_s23, 0 }
 0x36d   : > { %p1721_p9 = scmp.ge.s32.totalorder %s1255_s17, 2  ;;  %s719_s28 = scalar_lea.sflag [#allocation4], %s718_s11 }
 0x36f   : > { %p904_p4 = pnand %p1721_p9, %p1720_p6 }
 0x371   : > { %1230 = dma.done.wait (!%p904_p4), %s719_s28, 256  }
 0x372   : > { %1232 = vsyncadd (!%p904_p4), %s719_s28, 4294967040  ;;  %s22_s17 = sadd.s32 1, %s1255_s17   ;;  %s1722_s12 = smov %s1239_s13 }
 0x373   : > { %p19_p12 = scmp.ge.s32.totalorder %s22_s17, 4   ;;  %s1723_s13 = smov %s1243_s14 }
 0x374   : > { %s1724_s14 = smov %s1430_s26  ;;  %s1725_s15 = smov %s1251_s16 }
 0x375   : > { %s1726_s16 = smov %s1728_s27  ;;  %21 = sbr.rel (!%p19_p12) target bundleno = 10 (0xa), region = 95 }
 0x37c   :  { %724 = vsyncpa [#allocation3], 1 }
 0x37d   :  { %726 = vsyncpa [#allocation3 + $0x1], 1 }
 0x37e   :  { %727 = vsyncpa [#allocation6], 1 }
 0x37f   :  { %729 = vsyncpa [#allocation6 + $0x1], 1 }
 0x380   :  { %730 = vsyncpa [#allocation4], 1 }
 0x381   :  { %732 = vsyncpa [#allocation4 + $0x1], 1 }

</bundles_post_ra>
